<compile_context>
chip_gen: v7x
topology: tpu7x:2x2x1
jax: 0.10.0
libtpu: 0.0.40
codegen_flags: <defaults>
</compile_context>

<pallas_src>
import functools

import jax
import jax.numpy as jnp
from jax.experimental import pallas as pl
from jax.experimental.pallas import tpu as pltpu


_FUSED_WIDTH = 128   # one MXU / vreg lane tile
_LR_OFFSET = 64      # lr experts live at lanes [64, 64+k): half-vreg roll


def mlr_kernel(*refs, num_fields, feat):
    """refs = (idx_0, ..., idx_{NF-1}, w, bias, gate_mask, out)."""
    idx_refs = refs[:num_fields]
    w_ref, bias_ref, mask_ref, out_ref = refs[num_fields:]
    tb = out_ref.shape[0]

    # Rebuild the (TB, F) multi-hot on-chip from the integer indices (VPU).
    col = jax.lax.broadcasted_iota(jnp.int32, (tb, feat), 1)
    onehot = jnp.zeros((tb, feat), jnp.bfloat16)
    for idx_ref in idx_refs:                   # static unroll, NF is small
        onehot = onehot + (col == idx_ref[...]).astype(jnp.bfloat16)

    # Fused contraction: clf + lr logits in one (TB, 128) MXU result.
    logits = jnp.dot(onehot, w_ref[...], preferred_element_type=jnp.float32)
    logits = logits + bias_ref[...]            # clf half unbiased, lr half + bias

    # Gate: softmax over the k clf lanes via an additive -1e30 lane mask
    # (logits stay f32, so the mask is overflow-safe).
    gl = logits + mask_ref[...]
    m = jnp.max(gl, axis=1, keepdims=True)
    e = jnp.exp(gl - m)                        # masked lanes underflow to 0
    gate = e * pl.reciprocal(jnp.sum(e, axis=1, keepdims=True), approx=True)

    # Experts: sigmoid of the lr half, rolled under the gate lanes (XLU; the
    # wrapped-around lanes land where gate == 0, so they are harmless).
    sig = pl.reciprocal(1.0 + jnp.exp(-logits), approx=True)
    experts = pltpu.roll(sig, shift=_LR_OFFSET, axis=1)

    # Mixture: weighted sum over the k experts.
    out_ref[...] = jnp.sum(gate * experts, axis=1, keepdims=True)   # (TB, 1)


def _round_up(x, m):
    return ((x + m - 1) // m) * m


def _pick_batch_tile(B, F, num_fields, vmem_cap):
    """Largest batch tile keeping the resident table + per-tile working set
    inside a generation-aware VMEM budget, with >= ~4 grid steps when the
    batch allows it (v7x megacore / pipelining)."""
    budget = int(vmem_cap * 0.4)
    f_pad = _round_up(max(F, 1), 128)
    resident = _round_up(F, 16) * _FUSED_WIDTH * 2 + 2 * _FUSED_WIDTH * 4
    # per batch row: bf16 onehot + i32 iota + temps, f32 epilogue values,
    # double-buffered lane-padded (TB, 1) index blocks and the output block.
    per_row = (8 * f_pad
               + 8 * _FUSED_WIDTH * 4
               + (2 * num_fields + 2) * 128 * 4)
    # TODO(synk): if resident > budget, switch to F-axis tiling (see header).
    avail = max(budget - resident, per_row)
    tb = max(avail // per_row, 16)
    # keep >= ~4 grid steps when the batch allows it
    tb = min(tb, max(256, _round_up(-(-B // 4), 256)))
    tb = min(tb, 4096)
    if tb >= B:
        return B
    if tb >= 256:
        return (tb // 256) * 256
    return max((tb // 16) * 16, 8)


def mlr_forward(x_idx, clf_w, lr_w, lr_b, *, block_b=None):
    """MLR forward.
    x_idx : (B, num_fields) int32 global feature indices (field offsets added).
    clf_w : (F, k) Classifier embedding table.
    lr_w  : (F, k) the k LogisticRegression (F, 1) tables stacked on dim 1.
    lr_b  : (k,)   the k LogisticRegression biases."""
    B, num_fields = x_idx.shape
    F, k = clf_w.shape
    if k > _LR_OFFSET:
        raise ValueError(f"k={k} exceeds the fused half-width {_LR_OFFSET}")

    try:
        vmem_cap = int(pltpu.get_tpu_info().vmem_capacity_bytes)
    except Exception:                           # conservative (v7x-sized) fallback
        vmem_cap = 64 * 1024 * 1024

    if block_b is None:
        block_b = _pick_batch_tile(B, F, num_fields, vmem_cap)
    block_b = min(block_b, B)
    if block_b < B:
        block_b = max((block_b // 8) * 8, 8)

    # Fused, lane-padded (F, 128) bf16 table: clf at lanes [0, k), lr at lanes
    # [64, 64+k).  bf16 feeds the MXU (the onehot is exactly 0/1 -> lossless).
    w_pad = jnp.zeros((F, _FUSED_WIDTH), jnp.bfloat16)
    w_pad = w_pad.at[:, :k].set(clf_w.astype(jnp.bfloat16))
    w_pad = w_pad.at[:, _LR_OFFSET:_LR_OFFSET + k].set(lr_w.astype(jnp.bfloat16))
    bias = jnp.zeros((1, _FUSED_WIDTH), jnp.float32)
    bias = bias.at[0, _LR_OFFSET:_LR_OFFSET + k].set(lr_b.astype(jnp.float32))
    lane = jnp.arange(_FUSED_WIDTH)
    gate_mask = jnp.where(lane < k, 0.0, -1e30).astype(jnp.float32)[None, :]

    # NF tiny per-field index columns (no in-kernel lane slicing needed).
    idx_cols = [x_idx[:, f:f + 1].astype(jnp.int32) for f in range(num_fields)]

    grid = (pl.cdiv(B, block_b),)
    resident = lambda i: (0, 0)
    in_specs = ([pl.BlockSpec((block_b, 1), lambda i: (i, 0))
                 for _ in range(num_fields)]
                + [pl.BlockSpec((F, _FUSED_WIDTH), resident),   # VMEM-resident table
                   pl.BlockSpec((1, _FUSED_WIDTH), resident),
                   pl.BlockSpec((1, _FUSED_WIDTH), resident)])

    kernel = functools.partial(mlr_kernel, num_fields=num_fields, feat=F)
    return pl.pallas_call(
        kernel,
        out_shape=jax.ShapeDtypeStruct((B, 1), jnp.float32),
        grid=grid,
        in_specs=in_specs,
        out_specs=pl.BlockSpec((block_b, 1), lambda i: (i, 0)),
        compiler_params=pltpu.CompilerParams(
            dimension_semantics=("parallel",),
            vmem_limit_bytes=min(int(vmem_cap * 0.75), 100 * 1024 * 1024),
        ),
    )(*idx_cols, w_pad, bias, gate_mask)


def reference_forward(x_idx, clf_w, lr_w, lr_b):
    clf_logits = jnp.sum(clf_w[x_idx], axis=1)                  # (B, k)
    lr_logits = jnp.sum(lr_w[x_idx], axis=1) + lr_b[None, :]    # (B, k)
    gate = jax.nn.softmax(clf_logits, axis=1)
    return jnp.sum(gate * jax.nn.sigmoid(lr_logits), axis=1, keepdims=True)


if __name__ == "__main__":
    key = jax.random.PRNGKey(0)

    # Small synthetic config consistent with the module.
    feature_nums = (8, 8, 8, 8)          # 4 categorical fields
    F = sum(feature_nums)                # total feature vocabulary size = 32
    k = 5                                # number of LR experts
    B = 8                                # batch size

    k_idx, k_clf, k_lr, k_b = jax.random.split(key, 4)

    # Integer inputs: one index per field, per example (like the PyTorch x).
    offsets = jnp.array([0] + list(jnp.cumsum(jnp.array(feature_nums))[:-1]),
                        dtype=jnp.int32)
    x = jnp.stack(
        [jax.random.randint(jax.random.fold_in(k_idx, f), (B,), 0, feature_nums[f])
         for f in range(len(feature_nums))], axis=1)            # (B, num_fields)
    x_global = (x + offsets[None, :]).astype(jnp.int32)         # global indices

    # Deterministic synthetic parameters.
    clf_w = 0.1 * jax.random.normal(k_clf, (F, k), dtype=jnp.float32)
    lr_w = 0.1 * jax.random.normal(k_lr, (F, k), dtype=jnp.float32)
    lr_b = 0.05 * jax.random.normal(k_b, (k,), dtype=jnp.float32)

    out = mlr_forward(x_global, clf_w, lr_w, lr_b)
    out = jax.block_until_ready(out)

    ref = reference_forward(x_global, clf_w, lr_w, lr_b)
    assert out.shape == (B, 1)
    # bf16 weights + approx reciprocals => small, expected numeric drift.
    assert jnp.allclose(out, ref, atol=1e-2, rtol=1e-2)

    print("KERNEL_OK")
</pallas_src>

<mosaic_0001>
module attributes {stable_mosaic.version = 11 : i64} {
  func.func @mlr_kernel(%arg0: i32, %arg1: memref<8x1xi32, #tpu.memory_space<vmem>>, %arg2: memref<8x1xi32, #tpu.memory_space<vmem>>, %arg3: memref<8x1xi32, #tpu.memory_space<vmem>>, %arg4: memref<8x1xi32, #tpu.memory_space<vmem>>, %arg5: memref<32x128xbf16, #tpu.memory_space<vmem>>, %arg6: memref<1x128xf32, #tpu.memory_space<vmem>>, %arg7: memref<1x128xf32, #tpu.memory_space<vmem>>, %arg8: memref<8x1xf32, #tpu.memory_space<vmem>>) attributes {dimension_semantics = [#tpu.dimension_semantics<parallel>], iteration_bounds = array<i64: 1>, scalar_prefetch = 0 : i64, scratch_operands = 0 : i64, tpu.core_type = #tpu.core_type<tc>, window_params = [{transform_indices = @transform_0, window_bounds = array<i64: 8, 1>}, {transform_indices = @transform_1, window_bounds = array<i64: 8, 1>}, {transform_indices = @transform_2, window_bounds = array<i64: 8, 1>}, {transform_indices = @transform_3, window_bounds = array<i64: 8, 1>}, {pipeline_mode = #tpu.pipeline_mode<synchronous>, transform_indices = @transform_4, window_bounds = array<i64: 32, 128>}, {pipeline_mode = #tpu.pipeline_mode<synchronous>, transform_indices = @transform_5, window_bounds = array<i64: 1, 128>}, {pipeline_mode = #tpu.pipeline_mode<synchronous>, transform_indices = @transform_6, window_bounds = array<i64: 1, 128>}, {transform_indices = @transform_7, window_bounds = array<i64: 8, 1>}]} {
    %0 = tpu.iota {dimensions = array<i32: 1>} : vector<8x32xi32>
    %cst = arith.constant 0.000000e+00 : bf16
    %1 = vector.broadcast %cst : bf16 to vector<8x32xbf16>
    %c0 = arith.constant 0 : index
    %c0_0 = arith.constant 0 : index
    %2 = vector.load %arg1[%c0, %c0_0] : memref<8x1xi32, #tpu.memory_space<vmem>>, vector<8x1xi32>
    %3 = vector.broadcast %2 : vector<8x1xi32> to vector<8x32xi32>
    %4 = arith.cmpi eq, %0, %3 : vector<8x32xi32>
    %5 = arith.extui %4 : vector<8x32xi1> to vector<8x32xi32>
    %6 = arith.sitofp %5 : vector<8x32xi32> to vector<8x32xf32>
    %7 = arith.truncf %6 : vector<8x32xf32> to vector<8x32xbf16>
    %8 = arith.addf %1, %7 : vector<8x32xbf16>
    %c0_1 = arith.constant 0 : index
    %c0_2 = arith.constant 0 : index
    %9 = vector.load %arg2[%c0_1, %c0_2] : memref<8x1xi32, #tpu.memory_space<vmem>>, vector<8x1xi32>
    %10 = vector.broadcast %9 : vector<8x1xi32> to vector<8x32xi32>
    %11 = arith.cmpi eq, %0, %10 : vector<8x32xi32>
    %12 = arith.extui %11 : vector<8x32xi1> to vector<8x32xi32>
    %13 = arith.sitofp %12 : vector<8x32xi32> to vector<8x32xf32>
    %14 = arith.truncf %13 : vector<8x32xf32> to vector<8x32xbf16>
    %15 = arith.addf %8, %14 : vector<8x32xbf16>
    %c0_3 = arith.constant 0 : index
    %c0_4 = arith.constant 0 : index
    %16 = vector.load %arg3[%c0_3, %c0_4] : memref<8x1xi32, #tpu.memory_space<vmem>>, vector<8x1xi32>
    %17 = vector.broadcast %16 : vector<8x1xi32> to vector<8x32xi32>
    %18 = arith.cmpi eq, %0, %17 : vector<8x32xi32>
    %19 = arith.extui %18 : vector<8x32xi1> to vector<8x32xi32>
    %20 = arith.sitofp %19 : vector<8x32xi32> to vector<8x32xf32>
    %21 = arith.truncf %20 : vector<8x32xf32> to vector<8x32xbf16>
    %22 = arith.addf %15, %21 : vector<8x32xbf16>
    %c0_5 = arith.constant 0 : index
    %c0_6 = arith.constant 0 : index
    %23 = vector.load %arg4[%c0_5, %c0_6] : memref<8x1xi32, #tpu.memory_space<vmem>>, vector<8x1xi32>
    %24 = vector.broadcast %23 : vector<8x1xi32> to vector<8x32xi32>
    %25 = arith.cmpi eq, %0, %24 : vector<8x32xi32>
    %26 = arith.extui %25 : vector<8x32xi1> to vector<8x32xi32>
    %27 = arith.sitofp %26 : vector<8x32xi32> to vector<8x32xf32>
    %28 = arith.truncf %27 : vector<8x32xf32> to vector<8x32xbf16>
    %29 = arith.addf %22, %28 : vector<8x32xbf16>
    %c0_7 = arith.constant 0 : index
    %c0_8 = arith.constant 0 : index
    %30 = vector.load %arg5[%c0_7, %c0_8] : memref<32x128xbf16, #tpu.memory_space<vmem>>, vector<32x128xbf16>
    %cst_9 = arith.constant dense<0.000000e+00> : vector<8x128xf32>
    %31 = tpu.matmul %29, %30, %cst_9 {dimension_numbers = #tpu.dot_dimension_numbers<[1], [0], [0], [1], [0, 0, 1, 1], [], []>} : vector<8x32xbf16>, vector<32x128xbf16>, vector<8x128xf32> -> vector<8x128xf32>
    %c0_10 = arith.constant 0 : index
    %c0_11 = arith.constant 0 : index
    %32 = vector.load %arg6[%c0_10, %c0_11] : memref<1x128xf32, #tpu.memory_space<vmem>>, vector<1x128xf32>
    %33 = vector.broadcast %32 : vector<1x128xf32> to vector<8x128xf32>
    %34 = arith.addf %31, %33 : vector<8x128xf32>
    %c0_12 = arith.constant 0 : index
    %c0_13 = arith.constant 0 : index
    %35 = vector.load %arg7[%c0_12, %c0_13] : memref<1x128xf32, #tpu.memory_space<vmem>>, vector<1x128xf32>
    %36 = vector.broadcast %35 : vector<1x128xf32> to vector<8x128xf32>
    %37 = arith.addf %34, %36 : vector<8x128xf32>
    %cst_14 = arith.constant dense<0xFF800000> : vector<8xf32>
    %38 = vector.multi_reduction <maximumf>, %37, %cst_14 [1] : vector<8x128xf32> to vector<8xf32>
    %39 = vector.shape_cast %38 : vector<8xf32> to vector<8x1xf32>
    %40 = vector.broadcast %39 : vector<8x1xf32> to vector<8x128xf32>
    %41 = arith.subf %37, %40 : vector<8x128xf32>
    %42 = math.exp %41 : vector<8x128xf32>
    %cst_15 = arith.constant dense<0.000000e+00> : vector<8xf32>
    %43 = vector.multi_reduction <add>, %42, %cst_15 [1] : vector<8x128xf32> to vector<8xf32>
    %44 = vector.shape_cast %43 : vector<8xf32> to vector<8x1xf32>
    %45 = tpu.reciprocal %44 {approx = true} : vector<8x1xf32> -> vector<8x1xf32>
    %46 = vector.broadcast %45 : vector<8x1xf32> to vector<8x128xf32>
    %47 = arith.mulf %42, %46 : vector<8x128xf32>
    %cst_16 = arith.constant 0.000000e+00 : f32
    %48 = vector.broadcast %cst_16 : f32 to vector<8x128xf32>
    %49 = arith.subf %48, %34 : vector<8x128xf32>
    %50 = math.exp %49 : vector<8x128xf32>
    %cst_17 = arith.constant 1.000000e+00 : f32
    %51 = vector.broadcast %cst_17 : f32 to vector<8x128xf32>
    %52 = arith.addf %51, %50 : vector<8x128xf32>
    %53 = tpu.reciprocal %52 {approx = true} : vector<8x128xf32> -> vector<8x128xf32>
    %c64_i32 = arith.constant 64 : i32
    %54 = tpu.dynamic_rotate %53 by %c64_i32 dim 1 : vector<8x128xf32>, i32 -> vector<8x128xf32>
    %55 = arith.mulf %47, %54 : vector<8x128xf32>
    %cst_18 = arith.constant dense<0.000000e+00> : vector<8xf32>
    %56 = vector.multi_reduction <add>, %55, %cst_18 [1] : vector<8x128xf32> to vector<8xf32>
    %57 = vector.shape_cast %56 : vector<8xf32> to vector<8x1xf32>
    %c0_19 = arith.constant 0 : index
    %c0_20 = arith.constant 0 : index
    %58 = vector.load %arg8[%c0_19, %c0_20] : memref<8x1xf32, #tpu.memory_space<vmem>>, vector<8x1xf32>
    tpu.vector_store %arg8[%c0_19, %c0_20], %57 {strides = array<i32>} : memref<8x1xf32, #tpu.memory_space<vmem>>, vector<8x1xf32>,
    return
  }
  func.func @transform_0(%arg0: i32) -> (i32, i32) {
    %c0_i32 = arith.constant 0 : i32
    %c0_i32_0 = arith.constant 0 : i32
    return %arg0, %c0_i32 : i32, i32
  }
  func.func @transform_1(%arg0: i32) -> (i32, i32) {
    %c0_i32 = arith.constant 0 : i32
    %c0_i32_0 = arith.constant 0 : i32
    return %arg0, %c0_i32 : i32, i32
  }
  func.func @transform_2(%arg0: i32) -> (i32, i32) {
    %c0_i32 = arith.constant 0 : i32
    %c0_i32_0 = arith.constant 0 : i32
    return %arg0, %c0_i32 : i32, i32
  }
  func.func @transform_3(%arg0: i32) -> (i32, i32) {
    %c0_i32 = arith.constant 0 : i32
    %c0_i32_0 = arith.constant 0 : i32
    return %arg0, %c0_i32 : i32, i32
  }
  func.func @transform_4(%arg0: i32) -> (i32, i32) {
    %c0_i32 = arith.constant 0 : i32
    %c0_i32_0 = arith.constant 0 : i32
    %c0_i32_1 = arith.constant 0 : i32
    return %c0_i32, %c0_i32_0 : i32, i32
  }
  func.func @transform_5(%arg0: i32) -> (i32, i32) {
    %c0_i32 = arith.constant 0 : i32
    %c0_i32_0 = arith.constant 0 : i32
    %c0_i32_1 = arith.constant 0 : i32
    return %c0_i32, %c0_i32_0 : i32, i32
  }
  func.func @transform_6(%arg0: i32) -> (i32, i32) {
    %c0_i32 = arith.constant 0 : i32
    %c0_i32_0 = arith.constant 0 : i32
    %c0_i32_1 = arith.constant 0 : i32
    return %c0_i32, %c0_i32_0 : i32, i32
  }
  func.func @transform_7(%arg0: i32) -> (i32, i32) {
    %c0_i32 = arith.constant 0 : i32
    %c0_i32_0 = arith.constant 0 : i32
    return %arg0, %c0_i32 : i32, i32
  }
}

</mosaic_0001>

<bundles_post_ra>
// kernel: tpu_custom_call.1
= control target key start
LH: loop header
LB: loop body
LE: loop exit
PB: predicated region body
PF: predicated region fallthrough
CT: control target
= control target key end

     0   :  { %v201_v0 = vmov 0   ;;  %v202_v5 = vmov 0.0   ;;  %vm203_vm0 = vmmov 0   ;;  %v27_v8 = vlaneseq  ;;  %s204_s12 = smov 64   ;;  %s272_s2 = inlined_call_operand.vmem [shape: s32[8,1], index: 2, kind: input, shape index: {}]   ;;  %s273_s0 = inlined_call_operand.vmem [shape: s32[8,1], index: 0, kind: input, shape index: {}]   ;;  %s274_s3 = inlined_call_operand.vmem [shape: s32[8,1], index: 3, kind: input, shape index: {}]   ;;  %s275_s1 = inlined_call_operand.vmem [shape: s32[8,1], index: 1, kind: input, shape index: {}]   ;;  %s276_s4 = inlined_call_operand.vmem [shape: bf16[32,128], index: 4, kind: input, shape index: {}]   ;;  %s277_s5 = inlined_call_operand.vmem [shape: f32[1,128], index: 5, kind: input, shape index: {}]   ;;  %s278_s6 = inlined_call_operand.vmem [shape: f32[1,128], index: 6, kind: input, shape index: {}]   ;;  %s279_s7 = inlined_call_operand.vmem [shape: f32[8,1], index: 7, kind: output, shape index: {}]  }
   0x1   :  { %190 = vset.pattern.permute.xlu1 %v201_v0  ;;  %189 = vset.pattern.permute.xlu0 %v201_v0  ;;  %v47_v1 = vld [vmem:[%s272_s2] sm:$0xff]  ;;  %v192_v7 = vld [vmem:[%s276_s4 + $0x8] sm:$0xff]   ;;  %vm88_vm5 = vcmask 261120   ;;  %vm159_vm6 = vcmask 7168  }
   0x2   :  { %v29_v2 = vld [vmem:[%s273_s0] sm:$0xff]  ;;  %49 = vperm.xlu1 %190, %v47_v1   ;;  %177 = vmatprep.subr.bf16.mxu0 %v202_v5  ;;  %v28_v9 = vand.u32 127, %v27_v8 }
   0x3   :  { %31 = vperm.xlu0 %189, %v29_v2   ;;  %v56_v3 = vld [vmem:[%s274_s3] sm:$0xff]  ;;  %181 = vmatprep.mubr.msk.bf16.mxu0 %vm203_vm0, %v202_v5 }
   0x4   :  { %v38_v4 = vld [vmem:[%s275_s1] sm:$0xff] }
   0x5   :  { %v191_v6 = vld [vmem:[%s276_s4] sm:$0xff]  }
   0x6   :  { %58 = vperm.xlu1 %190, %v56_v3   ;;  %178 = vmatpush3.bf16.msra.mxu0 %v191_v6  ;;  %v169_v26 = vld [vmem:[%s277_s5] ss:$0 sm:$0xff] }
   0x7   :  { %40 = vperm.xlu0 %189, %v38_v4   ;;  %179 = vmatprep.subr.bf16.mxu0 %v202_v5  ;;  %v173_v28 = vld [vmem:[%s278_s6] ss:$0 sm:$0xff] }
   0xa   :  { %180 = vmatpush3.bf16.msra.mxu0 %v192_v7 }
  0x81   :  { %v50_v10 = vpop.permute.xlu1 %49 }
  0x82   :  { %v32_v11 = vpop.permute.xlu0 %31  ;;  %vm51_vm2 = vcmp.eq.s32.totalorder %v28_v9, %v50_v10 }
  0x83   :  { %vm33_vm1 = vcmp.eq.s32.totalorder %v28_v9, %v32_v11  ;;  %v167_v16 = vsel %vm51_vm2, 1.0, %v202_v5 }
  0x84   :  { %v165_v12 = vsel %vm33_vm1, 1.0, %v202_v5  ;;  %v54_v21 = vpack.c.bf16 %v167_v16, %v167_v16 }
  0x85   :  { %v36_v13 = vpack.c.bf16 %v165_v12, %v165_v12  ;;  %v59_v14 = vpop.permute.xlu1 %58 }
  0x86   :  { %v41_v15 = vpop.permute.xlu0 %40  ;;  %vm60_vm3 = vcmp.eq.s32.totalorder %v28_v9, %v59_v14 }
  0x87   :  { %vm42_vm4 = vcmp.eq.s32.totalorder %v28_v9, %v41_v15  ;;  %v37_v18 = vadd.bf16 0, %v36_v13  ;;  %v168_v20 = vsel %vm60_vm3, 1.0, %v202_v5 }
  0x88   :  { %v166_v17 = vsel %vm42_vm4, 1.0, %v202_v5  ;;  %v63_v23 = vpack.c.bf16 %v168_v20, %v168_v20 }
  0x89   :  { %v45_v19 = vpack.c.bf16 %v166_v17, %v166_v17 }
  0x8b   :  { %v46_v22 = vadd.bf16 %v45_v19, %v37_v18 }
  0x8d   :  { %v55_v24 = vadd.bf16 %v54_v21, %v46_v22 }
  0x8f   :  { %v64_v25 = vadd.bf16 %v63_v23, %v55_v24 }
  0x91   :  { %182 = vmatmul.mubr.msk.bf16.vlgmr.msra.gmra.mrb[0].mxu0 %vm88_vm5, %v64_v25 }
 0x164   :  { %v126_v27 = vpop.f32.mrb[0].mxu0 }
 0x165   :  { %v127_v29 = vadd.f32 %v169_v26, %v126_v27  ;;  %v183_v30 = vpop.f32.mrb[1].mxu0 }
 0x166   :  { %v129_v31 = vpop.f32.mrb[2].mxu0 }
 0x167   :  { %v149_v32 = vsub.f32 0.0, %v127_v29  ;;  %v184_v33 = vpop.f32.mrb[3].mxu0  ;;  %v139_v34 = vadd.f32 %v173_v28, %v127_v29 }
 0x169   :  { %v150_v35 = vmul.f32 1.442695, %v149_v32  ;;  %140 = vmax.xlane.f32.xlu0 %v139_v34 }
 0x16b   :  { %193 = vpow2.f32 %v150_v35 }
 0x175   :  { %v194_v36 = vpop.eup %193 }
 0x176   :  { %v152_v37 = vadd.f32 1.0, %v194_v36 }
 0x178   :  { %195 = vrcp.f32 %v152_v37 }
 0x182   :  { %v196_v38 = vpop.eup %195 }
 0x183   :  { %154 = vrot.lane.b32.xlu0 %v196_v38, %s204_s12 }
 0x1f6   :  { %v141_v39 = vpop.xlane.xlu0 %140 }
 0x1f7   :  { %v142_v40 = vsub.f32 %v139_v34, %v141_v39 }
 0x1f9   :  { %v143_v41 = vmul.f32 1.442695, %v142_v40 }
 0x1fa   :  { %v155_v46 = vpop.permute.xlu0 %154 }
 0x1fb   :  { %197 = vpow2.f32 %v143_v41 }
 0x205   :  { %v198_v42 = vpop.eup %197 }
 0x206   :  { %145 = vadd.xlane.f32.xlu1 %v198_v42 }
 0x293   :  { %v146_v43 = vpop.xlane.xlu1 %145 }
 0x294   :  { %199 = vrcp.f32 %v146_v43 }
 0x29e   :  { %v200_v44 = vpop.eup %199 }
 0x29f   :  { %v148_v45 = vmul.f32 %v200_v44, %v198_v42 }
 0x2a1   :  { %v156_v47 = vmul.f32 %v155_v46, %v148_v45 }
 0x2a3   :  { %157 = vadd.xlane.f32.xlu1 %v156_v47 }
 0x330   :  { %v158_v48 = vpop.xlane.xlu1 %157 }
 0x331   :  { %160 = vst.msk [vmem:[%s279_s7] sm:$0xff] %vm159_vm6, %v158_v48 }

</bundles_post_ra>
